<compile_context>
chip_gen: v6e
topology: v6e:2x2x1
jax: 0.10.0
libtpu: 0.0.40
codegen_flags: <defaults>
</compile_context>

<pallas_src>
import functools

import jax
import jax.numpy as jnp
import numpy as np
from jax.experimental import pallas as pl
from jax.experimental.pallas import tpu as pltpu

_VMEM_LIMIT_BYTES = 32 * 1024 * 1024   # safe scoped limit on v5e/v6e (128 MiB) and v7x (64 MiB)


def _choose_tile_rows(n, zc_dim, zd_dim, h2, d2, max_tile_rows=None,
                      budget_bytes=16 * 1024 * 1024):
    """VMEM-budget-derived row tile (multiple of 8, capped at 4096)."""
    # Streamed inputs are double-buffered f32; intermediates (h, pre/mu/logvar plus a few
    # zd-wide temporaries) are single-buffered f32.  Budget ~16 MiB so the 32 MiB scoped
    # VMEM limit keeps 2x headroom on every TPU generation.
    per_row_bytes = 2 * 4 * (zc_dim + zd_dim) + 4 * (h2 + d2 + 4 * zd_dim)
    tile = budget_bytes // max(per_row_bytes, 1)
    tile = min(tile, 4096)                       # per-step DMA >> ~0.35us fixed grid-step cost
    if max_tile_rows is not None:
        tile = min(tile, max_tile_rows)
    tile = max(tile, 8)
    if tile >= n:
        return n                                 # single block == full array dim (always legal)
    return max(8, (tile // 8) * 8)               # sublane multiple for interior blocks


def _resident_spec(arr):
    """BlockSpec that keeps a small operand resident in VMEM across all grid steps."""
    zeros = (0,) * arr.ndim
    return pl.BlockSpec(arr.shape, lambda i, _z=zeros: _z)


# ---------------------------------------------------------------------------
# Fused CLUB kernel (single pass over row tiles).
#   h       = relu(zc @ W1 + b1)
#   mu, pre = h @ W2 + b2          (heads fused block-diagonally when they fit one MXU tile)
#   logvar  = tanh(pre); inv_var = exp(-logvar)
#   Emits per-block partial sums needed by the exact moment-identity rewrite of
#   positive - negative = -0.5*inv_var*(zd^2 - E[zd^2] - 2*mu*(zd - E[zd])).
# ---------------------------------------------------------------------------
def _club_fused_kernel(zc_ref, zd_ref, w1_ref, b1_ref, w2_ref, b2_ref, out_ref, *,
                       n_rows, tile_rows, zd_dim, matmul_dtype, fused_heads, mask_tail):
    zc = zc_ref[...].astype(matmul_dtype)                                 # [TN, ZC]
    zd = zd_ref[...].astype(jnp.float32)                                  # [TN, ZD]

    if fused_heads:
        # One layer-1 matmul for both heads ([ZC, 2H]) + block-diagonal layer-2 ([2H, 2ZD]).
        h = jnp.maximum(
            jnp.dot(zc, w1_ref[...].astype(matmul_dtype),
                    preferred_element_type=jnp.float32) + b1_ref[...], 0.0)   # [TN, 2H]
        pre = jnp.dot(h.astype(matmul_dtype), w2_ref[...].astype(matmul_dtype),
                      preferred_element_type=jnp.float32) + b2_ref[...]       # [TN, 2ZD]
        mu = pre[:, :zd_dim]
        logvar_pre = pre[:, zd_dim:]
    else:
        # Wide-head fallback (v5e MXU-width guard): four separate matmuls, no zero blocks.
        hm = jnp.maximum(jnp.dot(zc, w1_ref[0].astype(matmul_dtype),
                                 preferred_element_type=jnp.float32) + b1_ref[0], 0.0)
        hv = jnp.maximum(jnp.dot(zc, w1_ref[1].astype(matmul_dtype),
                                 preferred_element_type=jnp.float32) + b1_ref[1], 0.0)
        mu = jnp.dot(hm.astype(matmul_dtype), w2_ref[0].astype(matmul_dtype),
                     preferred_element_type=jnp.float32) + b2_ref[0]
        logvar_pre = jnp.dot(hv.astype(matmul_dtype), w2_ref[1].astype(matmul_dtype),
                             preferred_element_type=jnp.float32) + b2_ref[1]

    logvar = jnp.tanh(logvar_pre)                                         # use_tanh=True (EUP)
    inv_var = jnp.exp(-logvar)                                            # 1/exp(logvar)  (EUP)

    if mask_tail:  # only emitted when N % tile_rows != 0 (partial last block)
        rid = pl.program_id(0) * tile_rows + jax.lax.broadcasted_iota(
            jnp.int32, (zd.shape[0], 1), 0)
        valid = rid < n_rows
        zd = jnp.where(valid, zd, 0.0)
        mu = jnp.where(valid, mu, 0.0)
        inv_var = jnp.where(valid, inv_var, 0.0)

    zd_sq = zd * zd
    iv_mu = inv_var * mu
    partials = jnp.concatenate([
        jnp.sum(zd, axis=0, keepdims=True),               # S_zd
        jnp.sum(zd_sq, axis=0, keepdims=True),            # S_zd^2
        jnp.sum(inv_var, axis=0, keepdims=True),          # S0
        jnp.sum(inv_var * zd_sq, axis=0, keepdims=True),  # S1
        jnp.sum(iv_mu, axis=0, keepdims=True),            # S2
        jnp.sum(iv_mu * zd, axis=0, keepdims=True),       # S3
    ], axis=0)                                            # [6, ZD]
    out_ref[0] = partials


# ---------------------------------------------------------------------------
# Host-side wrappers
# ---------------------------------------------------------------------------
def fuse_params(params, fuse_lane_limit=128):
    """Pack the four Linear layers (done once).

    When both fused output widths fit one 128-wide MXU tile (v5e constraint; v6e/v7x allow
    256), the two heads are fused: layer-1 weights concatenated along outputs ([ZC, 2H]) and
    layer-2 weights packed block-diagonally ([2H, 2*ZD]).  Otherwise the heads are kept
    separate (stacked) so no MXU passes are spent multiplying zero blocks.
    """
    w1m, b1m, w2m, b2m, w1v, b1v, w2v, b2v = params
    hidden = w1m.shape[1]
    zd_dim = w2m.shape[1]
    if 2 * hidden <= fuse_lane_limit and 2 * zd_dim <= fuse_lane_limit:
        w1 = jnp.concatenate([w1m, w1v], axis=1)                          # [ZC, 2H]
        b1 = jnp.concatenate([b1m, b1v], axis=1)                          # [1, 2H]
        w2 = jnp.zeros((2 * hidden, 2 * zd_dim), jnp.float32)             # block-diag [2H, 2ZD]
        w2 = w2.at[:hidden, :zd_dim].set(w2m).at[hidden:, zd_dim:].set(w2v)
        b2 = jnp.concatenate([b2m, b2v], axis=1)                          # [1, 2ZD]
    else:
        w1 = jnp.stack([w1m, w1v], axis=0)                                # [2, ZC, H]
        b1 = jnp.stack([b1m, b1v], axis=0)                                # [2, 1, H]
        w2 = jnp.stack([w2m, w2v], axis=0)                                # [2, H, ZD]
        b2 = jnp.stack([b2m, b2v], axis=0)                                # [2, 1, ZD]
    return w1, b1, w2, b2


@functools.partial(jax.jit, static_argnames=("matmul_dtype", "max_tile_rows"))
def club_forward(z_c, z_d, fused_params, matmul_dtype=jnp.bfloat16, max_tile_rows=None):
    """Returns (mi, 0.0, 0.0) — same tuple as CLUB.forward."""
    w1, b1, w2, b2 = fused_params
    n, zc_dim = z_c.shape
    zd_dim = z_d.shape[1]
    fused_heads = (w1.ndim == 2)
    h2 = w1.shape[1] if fused_heads else 2 * w1.shape[2]                  # fused hidden width
    d2 = w2.shape[1] if fused_heads else 2 * w2.shape[2]                  # fused output width

    tile_rows = _choose_tile_rows(n, zc_dim, zd_dim, h2, d2, max_tile_rows)
    num_blocks = pl.cdiv(n, tile_rows)
    mask_tail = (num_blocks * tile_rows != n)                             # partial last block?

    # MXU operands in the requested dtype (weights cast once here; z_c cast in-kernel to avoid
    # an extra XLA pass over the large input).  Biases / elementwise math stay f32.
    w1 = w1.astype(matmul_dtype)
    w2 = w2.astype(matmul_dtype)

    kernel = functools.partial(
        _club_fused_kernel, n_rows=n, tile_rows=tile_rows, zd_dim=zd_dim,
        matmul_dtype=matmul_dtype, fused_heads=fused_heads, mask_tail=mask_tail)

    # Single pass; independent row tiles -> "parallel" (v7x megacore shards blocks across TCs).
    partials = pl.pallas_call(
        kernel,
        out_shape=jax.ShapeDtypeStruct((num_blocks, 6, zd_dim), jnp.float32),
        grid=(num_blocks,),
        in_specs=[
            pl.BlockSpec((tile_rows, zc_dim), lambda i: (i, 0)),          # z_c tile (streamed)
            pl.BlockSpec((tile_rows, zd_dim), lambda i: (i, 0)),          # z_d tile (streamed)
            _resident_spec(w1), _resident_spec(b1),                       # weights (resident)
            _resident_spec(w2), _resident_spec(b2),
        ],
        out_specs=pl.BlockSpec((1, 6, zd_dim), lambda i: (i, 0, 0)),      # per-block partials
        compiler_params=pltpu.CompilerParams(
            dimension_semantics=("parallel",), vmem_limit_bytes=_VMEM_LIMIT_BYTES),
    )(z_c, z_d, w1, b1, w2, b2)

    # Tiny epilogue: combine the per-block partial sums (exact moment-identity rewrite).
    sums = jnp.sum(partials, axis=0)                                      # [6, ZD]
    e_zd = sums[0] / n
    e_zdsq = sums[1] / n
    s_iv, s_iv_zdsq, s_iv_mu, s_iv_mu_zd = sums[2], sums[3], sums[4], sums[5]
    total = -0.5 * jnp.sum(s_iv_zdsq - e_zdsq * s_iv
                           - 2.0 * s_iv_mu_zd + 2.0 * e_zd * s_iv_mu)
    mi = total / n
    return mi, 0.0, 0.0


def club_forward_ref(z_c, z_d, params, matmul_dtype=jnp.float32):
    """Pure-JAX reference reproducing the PyTorch semantics (original N x N formulation)."""
    w1m, b1m, w2m, b2m, w1v, b1v, w2v, b2v = params
    mm = lambda a, b: jnp.dot(a.astype(matmul_dtype), b.astype(matmul_dtype),
                              preferred_element_type=jnp.float32)
    mu = mm(jnp.maximum(mm(z_c, w1m) + b1m, 0.0), w2m) + b2m
    logvar = jnp.tanh(mm(jnp.maximum(mm(z_c, w1v) + b1v, 0.0), w2v) + b2v)
    positive = -(mu - z_d) ** 2 / 2.0 / jnp.exp(logvar)
    negative = -((z_d[None, :, :] - mu[:, None, :]) ** 2).mean(axis=1) / 2.0 / jnp.exp(logvar)
    return (positive.sum(-1) - negative.sum(-1)).mean()


def init_params(key, zc_dim, hidden, zd_dim):
    """Deterministic PyTorch-style uniform(-1/sqrt(fan_in), +1/sqrt(fan_in)) init."""
    def linear(k, fan_in, fan_out):
        kw, kb = jax.random.split(k)
        bound = 1.0 / np.sqrt(fan_in)
        w = jax.random.uniform(kw, (fan_in, fan_out), jnp.float32, -bound, bound)
        b = jax.random.uniform(kb, (1, fan_out), jnp.float32, -bound, bound)
        return w, b

    k_mu1, k_mu2, k_lv1, k_lv2 = jax.random.split(key, 4)
    w1m, b1m = linear(k_mu1, zc_dim, hidden)
    w2m, b2m = linear(k_mu2, hidden, zd_dim)
    w1v, b1v = linear(k_lv1, zc_dim, hidden)
    w2v, b2v = linear(k_lv2, zc_dim if False else hidden, zd_dim)
    return (w1m, b1m, w2m, b2m, w1v, b1v, w2v, b2v)


def _run_case(key, n, zc_dim, zd_dim, check_bf16=False, also_max_tile_rows=None):
    k_zc, k_zd, k_params = jax.random.split(key, 3)
    z_c = jax.random.normal(k_zc, (n, zc_dim), jnp.float32)
    z_d = jax.random.normal(k_zd, (n, zd_dim), jnp.float32)
    params = init_params(k_params, zc_dim, zc_dim, zd_dim)    # hidden = zc_dim (module spec)
    fused = fuse_params(params)

    mi_ref = np.asarray(jax.block_until_ready(club_forward_ref(z_c, z_d, params)))

    # f32 MXU path (exact algebraic rewrite -> tight tolerance).
    mi, a, b = club_forward(z_c, z_d, fused, matmul_dtype=jnp.float32)
    mi = np.asarray(jax.block_until_ready(mi))
    np.testing.assert_allclose(mi, mi_ref, rtol=5e-4, atol=5e-4)
    assert a == 0.0 and b == 0.0

    # Forced small tiles: exercises the multi-block grid + partial (masked) last block.
    if also_max_tile_rows is not None:
        mi2, _, _ = club_forward(z_c, z_d, fused, matmul_dtype=jnp.float32,
                                 max_tile_rows=also_max_tile_rows)
        mi2 = np.asarray(jax.block_until_ready(mi2))
        np.testing.assert_allclose(mi2, mi_ref, rtol=5e-4, atol=5e-4)

    # Default bf16 MXU path, tolerance-checked against a bf16-matmul reference.
    if check_bf16:
        mi_ref_bf16 = np.asarray(jax.block_until_ready(
            club_forward_ref(z_c, z_d, params, matmul_dtype=jnp.bfloat16)))
        mi_bf16, _, _ = club_forward(z_c, z_d, fused)         # default matmul_dtype=bfloat16
        mi_bf16 = np.asarray(jax.block_until_ready(mi_bf16))
        np.testing.assert_allclose(mi_bf16, mi_ref_bf16, rtol=1e-3, atol=1e-3)


if __name__ == "__main__":
    root = jax.random.PRNGKey(0)
    k_small, k_large, k_wide = jax.random.split(root, 3)

    # Module's intended small shapes (sample_size=8, zc_dim=zd_dim=32): fused heads, one block.
    _run_case(k_small, n=8, zc_dim=32, zd_dim=32, check_bf16=True)
    # Larger N: default single large tile AND a forced 3-block grid with a partial masked tail.
    _run_case(k_large, n=600, zc_dim=48, zd_dim=40, check_bf16=True, also_max_tile_rows=256)
    # Wide hidden (2H=144 > 128): exercises the non-fused layer-2 fallback (v5e MXU guard).
    _run_case(k_wide, n=64, zc_dim=72, zd_dim=40, check_bf16=False)

    print("KERNEL_OK")
</pallas_src>

<mosaic_0001>
module attributes {stable_mosaic.version = 11 : i64} {
  func.func @_club_fused_kernel(%arg0: i32, %arg1: memref<8x32xf32, #tpu.memory_space<vmem>>, %arg2: memref<8x32xf32, #tpu.memory_space<vmem>>, %arg3: memref<32x64xf32, #tpu.memory_space<vmem>>, %arg4: memref<1x64xf32, #tpu.memory_space<vmem>>, %arg5: memref<64x64xf32, #tpu.memory_space<vmem>>, %arg6: memref<1x64xf32, #tpu.memory_space<vmem>>, %arg7: memref<1x6x32xf32, #tpu.memory_space<vmem>>) attributes {dimension_semantics = [#tpu.dimension_semantics<parallel>], iteration_bounds = array<i64: 1>, scalar_prefetch = 0 : i64, scratch_operands = 0 : i64, tpu.core_type = #tpu.core_type<tc>, window_params = [{transform_indices = @transform_0, window_bounds = array<i64: 8, 32>}, {transform_indices = @transform_1, window_bounds = array<i64: 8, 32>}, {pipeline_mode = #tpu.pipeline_mode<synchronous>, transform_indices = @transform_2, window_bounds = array<i64: 32, 64>}, {pipeline_mode = #tpu.pipeline_mode<synchronous>, transform_indices = @transform_3, window_bounds = array<i64: 1, 64>}, {pipeline_mode = #tpu.pipeline_mode<synchronous>, transform_indices = @transform_4, window_bounds = array<i64: 64, 64>}, {pipeline_mode = #tpu.pipeline_mode<synchronous>, transform_indices = @transform_5, window_bounds = array<i64: 1, 64>}, {transform_indices = @transform_6, window_bounds = array<i64: 1, 6, 32>}]} {
    %c0 = arith.constant 0 : index
    %c0_0 = arith.constant 0 : index
    %0 = vector.load %arg1[%c0, %c0_0] : memref<8x32xf32, #tpu.memory_space<vmem>>, vector<8x32xf32>
    %c0_1 = arith.constant 0 : index
    %c0_2 = arith.constant 0 : index
    %1 = vector.load %arg2[%c0_1, %c0_2] : memref<8x32xf32, #tpu.memory_space<vmem>>, vector<8x32xf32>
    %c0_3 = arith.constant 0 : index
    %c0_4 = arith.constant 0 : index
    %2 = vector.load %arg3[%c0_3, %c0_4] : memref<32x64xf32, #tpu.memory_space<vmem>>, vector<32x64xf32>
    %cst = arith.constant dense<0.000000e+00> : vector<8x64xf32>
    %3 = tpu.matmul %0, %2, %cst {dimension_numbers = #tpu.dot_dimension_numbers<[1], [0], [0], [1], [0, 0, 1, 1], [], []>} : vector<8x32xf32>, vector<32x64xf32>, vector<8x64xf32> -> vector<8x64xf32>
    %c0_5 = arith.constant 0 : index
    %c0_6 = arith.constant 0 : index
    %4 = vector.load %arg4[%c0_5, %c0_6] : memref<1x64xf32, #tpu.memory_space<vmem>>, vector<1x64xf32>
    %5 = vector.broadcast %4 : vector<1x64xf32> to vector<8x64xf32>
    %6 = arith.addf %3, %5 : vector<8x64xf32>
    %cst_7 = arith.constant 0.000000e+00 : f32
    %7 = vector.broadcast %cst_7 : f32 to vector<8x64xf32>
    %8 = arith.maximumf %6, %7 : vector<8x64xf32>
    %c0_8 = arith.constant 0 : index
    %c0_9 = arith.constant 0 : index
    %9 = vector.load %arg5[%c0_8, %c0_9] : memref<64x64xf32, #tpu.memory_space<vmem>>, vector<64x64xf32>
    %cst_10 = arith.constant dense<0.000000e+00> : vector<8x64xf32>
    %10 = tpu.matmul %8, %9, %cst_10 {dimension_numbers = #tpu.dot_dimension_numbers<[1], [0], [0], [1], [0, 0, 1, 1], [], []>} : vector<8x64xf32>, vector<64x64xf32>, vector<8x64xf32> -> vector<8x64xf32>
    %c0_11 = arith.constant 0 : index
    %c0_12 = arith.constant 0 : index
    %11 = vector.load %arg6[%c0_11, %c0_12] : memref<1x64xf32, #tpu.memory_space<vmem>>, vector<1x64xf32>
    %12 = vector.broadcast %11 : vector<1x64xf32> to vector<8x64xf32>
    %13 = arith.addf %10, %12 : vector<8x64xf32>
    %14 = vector.extract_strided_slice %13 {offsets = [0, 0], sizes = [8, 32], strides = [1, 1]} : vector<8x64xf32> to vector<8x32xf32>
    %15 = vector.extract_strided_slice %13 {offsets = [0, 32], sizes = [8, 32], strides = [1, 1]} : vector<8x64xf32> to vector<8x32xf32>
    %16 = math.tanh %15 : vector<8x32xf32>
    %cst_13 = arith.constant 0.000000e+00 : f32
    %17 = vector.broadcast %cst_13 : f32 to vector<8x32xf32>
    %18 = arith.subf %17, %16 : vector<8x32xf32>
    %19 = math.exp %18 : vector<8x32xf32>
    %20 = arith.mulf %1, %1 : vector<8x32xf32>
    %21 = arith.mulf %19, %14 : vector<8x32xf32>
    %cst_14 = arith.constant dense<0.000000e+00> : vector<32xf32>
    %22 = vector.multi_reduction <add>, %1, %cst_14 [0] : vector<8x32xf32> to vector<32xf32>
    %23 = vector.shape_cast %22 : vector<32xf32> to vector<1x32xf32>
    %cst_15 = arith.constant dense<0.000000e+00> : vector<32xf32>
    %24 = vector.multi_reduction <add>, %20, %cst_15 [0] : vector<8x32xf32> to vector<32xf32>
    %25 = vector.shape_cast %24 : vector<32xf32> to vector<1x32xf32>
    %cst_16 = arith.constant dense<0.000000e+00> : vector<32xf32>
    %26 = vector.multi_reduction <add>, %19, %cst_16 [0] : vector<8x32xf32> to vector<32xf32>
    %27 = vector.shape_cast %26 : vector<32xf32> to vector<1x32xf32>
    %28 = arith.mulf %19, %20 : vector<8x32xf32>
    %cst_17 = arith.constant dense<0.000000e+00> : vector<32xf32>
    %29 = vector.multi_reduction <add>, %28, %cst_17 [0] : vector<8x32xf32> to vector<32xf32>
    %30 = vector.shape_cast %29 : vector<32xf32> to vector<1x32xf32>
    %cst_18 = arith.constant dense<0.000000e+00> : vector<32xf32>
    %31 = vector.multi_reduction <add>, %21, %cst_18 [0] : vector<8x32xf32> to vector<32xf32>
    %32 = vector.shape_cast %31 : vector<32xf32> to vector<1x32xf32>
    %33 = arith.mulf %21, %1 : vector<8x32xf32>
    %cst_19 = arith.constant dense<0.000000e+00> : vector<32xf32>
    %34 = vector.multi_reduction <add>, %33, %cst_19 [0] : vector<8x32xf32> to vector<32xf32>
    %35 = vector.shape_cast %34 : vector<32xf32> to vector<1x32xf32>
    %36 = tpu.concatenate %23, %25, %27, %30, %32, %35 in 0 : vector<1x32xf32>, vector<1x32xf32>, vector<1x32xf32>, vector<1x32xf32>, vector<1x32xf32>, vector<1x32xf32> -> vector<6x32xf32>
    %c0_20 = arith.constant 0 : index
    %c0_21 = arith.constant 0 : index
    %c0_22 = arith.constant 0 : index
    %37 = vector.load %arg7[%c0_20, %c0_21, %c0_22] : memref<1x6x32xf32, #tpu.memory_space<vmem>>, vector<1x6x32xf32>
    %38 = vector.shape_cast %37 : vector<1x6x32xf32> to vector<6x32xf32>
    %39 = vector.shape_cast %36 : vector<6x32xf32> to vector<1x6x32xf32>
    tpu.vector_store %arg7[%c0_20, %c0_21, %c0_22], %39 {strides = array<i32>} : memref<1x6x32xf32, #tpu.memory_space<vmem>>, vector<1x6x32xf32>,
    return
  }
  func.func @transform_0(%arg0: i32) -> (i32, i32) {
    %c0_i32 = arith.constant 0 : i32
    %c0_i32_0 = arith.constant 0 : i32
    return %arg0, %c0_i32 : i32, i32
  }
  func.func @transform_1(%arg0: i32) -> (i32, i32) {
    %c0_i32 = arith.constant 0 : i32
    %c0_i32_0 = arith.constant 0 : i32
    return %arg0, %c0_i32 : i32, i32
  }
  func.func @transform_2(%arg0: i32) -> (i32, i32) {
    %c0_i32 = arith.constant 0 : i32
    %c0_i32_0 = arith.constant 0 : i32
    %c0_i32_1 = arith.constant 0 : i32
    return %c0_i32, %c0_i32_0 : i32, i32
  }
  func.func @transform_3(%arg0: i32) -> (i32, i32) {
    %c0_i32 = arith.constant 0 : i32
    %c0_i32_0 = arith.constant 0 : i32
    %c0_i32_1 = arith.constant 0 : i32
    return %c0_i32, %c0_i32_0 : i32, i32
  }
  func.func @transform_4(%arg0: i32) -> (i32, i32) {
    %c0_i32 = arith.constant 0 : i32
    %c0_i32_0 = arith.constant 0 : i32
    %c0_i32_1 = arith.constant 0 : i32
    return %c0_i32, %c0_i32_0 : i32, i32
  }
  func.func @transform_5(%arg0: i32) -> (i32, i32) {
    %c0_i32 = arith.constant 0 : i32
    %c0_i32_0 = arith.constant 0 : i32
    %c0_i32_1 = arith.constant 0 : i32
    return %c0_i32, %c0_i32_0 : i32, i32
  }
  func.func @transform_6(%arg0: i32) -> (i32, i32, i32) {
    %c0_i32 = arith.constant 0 : i32
    %c0_i32_0 = arith.constant 0 : i32
    %c0_i32_1 = arith.constant 0 : i32
    return %arg0, %c0_i32, %c0_i32_0 : i32, i32, i32
  }
}

</mosaic_0001>

<bundles_post_ra>
// kernel: club_forward.1
= control target key start
LH: loop header
LB: loop body
LE: loop exit
PB: predicated region body
PF: predicated region fallthrough
CT: control target
= control target key end

     0   :  { %11 = vsyncpa [#allocation3], 0  ;;  %s574_s0 = inlined_call_operand.hbm [shape: f32[8,32], index: 0, kind: input, shape index: {}]   ;;  %s575_s1 = inlined_call_operand.hbm [shape: f32[8,32], index: 1, kind: input, shape index: {}]   ;;  %s576_s2 = inlined_call_operand.hbm [shape: f32[32,64], index: 2, kind: input, shape index: {}]   ;;  %s577_s3 = inlined_call_operand.vmem [shape: f32[1,64], index: 3, kind: input, shape index: {}]   ;;  %s578_s4 = inlined_call_operand.hbm [shape: f32[64,64], index: 4, kind: input, shape index: {}]   ;;  %s579_s5 = inlined_call_operand.vmem [shape: f32[1,64], index: 5, kind: input, shape index: {}]   ;;  %s580_s6 = inlined_call_operand.vmem [shape: f32[1,6,32], index: 6, kind: output, shape index: {}]  }
   0x1   :  { %12 = vsyncpa [#allocation5], 0 }
   0x2   :  { %13 = vsyncpa [#allocation8], 0  ;;  %s497_s21 = smov [#allocation4]   ;;  %s498_s23 = smov [#allocation2]  }
   0x3   :  { %s30_s22 = sshll.u32 %s497_s21, 4  ;;  %s20_s24 = sshll.u32 %s498_s23, 4  ;;  %s31_s22 = int_to_ptr.vmem [resolvable:$true] %s30_s22  ;;  %s21_s24 = int_to_ptr.vmem [resolvable:$true] %s20_s24 }
   0x4   :  { %s419_s25 = scalar_lea.vmem %s31_s22, 128  ;;  %p424_p1 = scmp.lt.s32.totalorder %s31_s22, %s31_s22 }
   0x5   :  { %p420_p0 = scmp.ne.s32.totalorder %s31_s22, %s419_s25  ;;  %p425_p2 = scmp.lt.s32.totalorder %s419_s25, %s419_s25 }
   0x7   :  { %p426_p3 = por %p425_p2, %p424_p1 }
   0x9   :  { %p427_p4 = pnand %p426_p3, %p420_p0 }
   0xb   :  { %430 = shalt.err (!%p427_p4)
}
   0xc   :  { %33 = dma.hbm_to_vmem [thread:$0]  %s575_s1, 128, %s31_s22, [#allocation5]  }
   0xd   :  { %s439_s28 = scalar_lea.vmem %s21_s24, 128  ;;  %p444_p6 = scmp.lt.s32.totalorder %s21_s24, %s21_s24 }
   0xe   :  { %p440_p5 = scmp.ne.s32.totalorder %s21_s24, %s439_s28  ;;  %p445_p7 = scmp.lt.s32.totalorder %s439_s28, %s439_s28 }
  0x10   :  { %p446_p8 = por %p445_p7, %p444_p6 }
  0x12   :  { %p447_p9 = pnand %p446_p8, %p440_p5 }
  0x14   :  { %450 = shalt.err (!%p447_p9)
}
  0x15   :  { %23 = dma.hbm_to_vmem [thread:$0]  %s574_s0, 128, %s21_s24, [#allocation3]  }
  0x16   :  { %s499_s7 = smov [#allocation6]  }
  0x17   :  { %s39_s8 = sshll.u32 %s499_s7, 4  ;;  %s40_s8 = int_to_ptr.vmem [resolvable:$true] %s39_s8 }
  0x18   :  { %s459_s9 = scalar_lea.vmem %s40_s8, 512  ;;  %p464_p11 = scmp.lt.s32.totalorder %s40_s8, %s40_s8 }
  0x19   :  { %p460_p10 = scmp.ne.s32.totalorder %s40_s8, %s459_s9  ;;  %p465_p12 = scmp.lt.s32.totalorder %s459_s9, %s459_s9 }
  0x1b   :  { %p466_p13 = por %p465_p12, %p464_p11 }
  0x1d   :  { %p467_p0 = pnand %p466_p13, %p460_p10 }
  0x1f   :  { %470 = shalt.err (!%p467_p0)
}
  0x20   :  { %s500_s1 = smov 128   ;;  %s501_s10 = smov 8  }
  0x21   :  { %45 = dma.hbm_to_vmem [thread:$0]  %s576_s2, 512, %s40_s8, [#allocation5], %s500_s1, %s500_s1, %s501_s10  }
  0x22   :  { %s502_s13 = smov [#allocation7]  }
  0x23   :  { %s53_s14 = sshll.u32 %s502_s13, 4  ;;  %s54_s14 = int_to_ptr.vmem [resolvable:$true] %s53_s14 }
  0x24   :  { %s479_s0 = scalar_lea.vmem %s54_s14, 1024  ;;  %p484_p2 = scmp.lt.s32.totalorder %s54_s14, %s54_s14 }
  0x25   :  { %p480_p1 = scmp.ne.s32.totalorder %s54_s14, %s479_s0  ;;  %p485_p3 = scmp.lt.s32.totalorder %s479_s0, %s479_s0 }
  0x27   :  { %p486_p4 = por %p485_p3, %p484_p2 }
  0x29   :  { %p487_p5 = pnand %p486_p4, %p480_p1 }
  0x2b   :  { %490 = shalt.err (!%p487_p5)
}
  0x2c   :  { %59 = dma.hbm_to_vmem [thread:$0]  %s578_s4, 1024, %s54_s14, [#allocation8], %s500_s1, %s500_s1, %s501_s10  }
  0x2d   :  { %491 = dma.done.wait [#allocation3], 128  }
  0x2e   :  { %492 = vsyncadd [#allocation3], 4294967168 }
  0x2f   :  { %493 = dma.done.wait [#allocation5], 640  }
  0x30   :  { %494 = vsyncadd [#allocation5], 4294966656 }
  0x31   :  { %495 = dma.done.wait [#allocation8], 1024  }
  0x32   :  { %496 = vsyncadd [#allocation8], 4294966272  ;;  %v503_v0 = vmov 0.0   ;;  %vm504_vm0 = vmmov 0   ;;  %v79_v1 = vld [vmem:[#allocation6 + $0x18] sm:$0xff]  ;;  %v78_v2 = vld [vmem:[#allocation6 + $0x10] sm:$0xff] }
  0x33   :  { %367 = vmatprep.subr.mxu0 %v503_v0  ;;  %375 = vmatprep.mubr.msk.f32.mxu0 %vm504_vm0, %v503_v0  ;;  %v169_v3 = vld [vmem:[#allocation7 + $0x38] sm:$0xff]  ;;  %v77_v4 = vld [vmem:[#allocation6 + $0x8] sm:$0xff]  ;;  %v168_v5 = vld [vmem:[#allocation7 + $0x30] sm:$0xff]  ;;  %vm87_vm1 = vcmask 261120   ;;  %vm177_vm2 = vcmask 523264   ;;  %s505_s17 = smov 32  }
  0x34   :  { %378 = vmatprep.subr.mxu1 %v503_v0  ;;  %394 = vmatprep.mubr.msk.f32.mxu1 %vm504_vm0, %v503_v0  ;;  %v167_v6 = vld [vmem:[#allocation7 + $0x28] sm:$0xff]  ;;  %v76_v7 = vld [vmem:[#allocation6] sm:$0xff]  ;;  %v74_v8 = vld [vmem:[#allocation2] sm:$0xff]  ;;  %vm275_vm3 = vcmask 523520   ;;  %vm330_vm4 = vcmask 1040384   ;;  %vm332_vm5 = vcmask 1041408  }
  0x35   :  { %368 = vmatpush3.msra.mxu0 %v79_v1  ;;  %379 = vmatpush3.msra.mxu1 %v169_v3  ;;  %v166_v9 = vld [vmem:[#allocation7 + $0x20] sm:$0xff]  ;;  %v165_v10 = vld [vmem:[#allocation7 + $0x18] sm:$0xff]  ;;  %v164_v11 = vld [vmem:[#allocation7 + $0x10] sm:$0xff]  ;;  %vm334_vm6 = vcmask 1042432   ;;  %vm336_vm7 = vcmask 1043456   ;;  %vm338_vm8 = vcmask 1044480  }
  0x36   :  { %369 = vmatprep.subr.mxu0 %v503_v0  ;;  %380 = vmatprep.subr.mxu1 %v503_v0  ;;  %v163_v12 = vld [vmem:[#allocation7 + $0x8] sm:$0xff]  ;;  %v162_v13 = vld [vmem:[#allocation7] sm:$0xff]  ;;  %v349_v14 = vld [vmem:[%s577_s3] ss:$0 sm:$0xff]  ;;  %s506_s3 = smov 96   ;;  %vm340_vm9 = vcmask 259072  }
  0x37   :  { %370 = vmatpush3.msra.mxu0 %v78_v2  ;;  %381 = vmatpush3.msra.mxu1 %v168_v5  ;;  %v75_v19 = vld [vmem:[#allocation4] sm:$0xff]  ;;  %v351_v20 = vld [vmem:[%s579_s5] ss:$0 sm:$0xff] }
  0x38   :  { %371 = vmatprep.subr.mxu0 %v503_v0  ;;  %382 = vmatprep.subr.mxu1 %v503_v0  ;;  %v255_v24 = vmul.f32 %v75_v19, %v75_v19  ;;  %v261_v63 = vsel %vm87_vm1, %v75_v19, 0.0 }
  0x39   :  { %372 = vmatpush3.msra.mxu0 %v77_v4  ;;  %383 = vmatpush3.msra.mxu1 %v167_v6  ;;  %v262_v1 = vrot.slane %v261_v63, 4 }
  0x3a   :  { %373 = vmatprep.subr.mxu0 %v503_v0  ;;  %384 = vmatprep.subr.mxu1 %v503_v0 }
  0x3b   :  { %374 = vmatpush3.msra.mxu0 %v76_v7  ;;  %385 = vmatpush3.msra.mxu1 %v166_v9  ;;  %v263_v3 = vadd.f32 %v262_v1, %v261_v63 }
  0x3c   :  { %376 = vmatmul.mubr.msk.f32.vlgmr.msra.gmra.mxu0 %vm87_vm1, %v74_v8  ;;  %386 = vmatprep.subr.mxu1 %v503_v0 }
  0x3d   :  { %387 = vmatpush3.msra.mxu1 %v165_v10  ;;  %303 = vrot.lane.b32.xlu1 %v75_v19, %s505_s17  ;;  %v264_v5 = vrot.slane %v263_v3, 2 }
  0x3e   :  { %388 = vmatprep.subr.mxu1 %v503_v0 }
  0x3f   :  { %389 = vmatpush3.msra.mxu1 %v164_v11  ;;  %v265_v7 = vadd.f32 %v264_v5, %v263_v3 }
  0x40   :  { %390 = vmatprep.subr.mxu1 %v503_v0 }
  0x41   :  { %391 = vmatpush3.msra.mxu1 %v163_v12  ;;  %v266_v9 = vrot.slane %v265_v7, 1 }
  0x42   :  { %392 = vmatprep.subr.mxu1 %v503_v0  ;;  %v268_v0 = vsel %vm87_vm1, %v255_v24, 0.0 }
  0x43   :  { %393 = vmatpush3.msra.mxu1 %v162_v13  ;;  %v269_v2 = vrot.slane %v268_v0, 4  ;;  %v267_v11 = vadd.f32 %v266_v9, %v265_v7 }
  0x45   :  { %v270_v4 = vadd.f32 %v269_v2, %v268_v0 }
  0x47   :  { %v271_v6 = vrot.slane %v270_v4, 2 }
  0x49   :  { %v272_v8 = vadd.f32 %v271_v6, %v270_v4 }
  0x4b   :  { %v273_v10 = vrot.slane %v272_v8, 1 }
  0x4d   :  { %v274_v12 = vadd.f32 %v273_v10, %v272_v8 }
  0x4f   :  { %v331_v13 = vsel %vm330_vm4, %v267_v11, %v274_v12 }
  0xaf   :  { %v304_v37 = vpop.permute.xlu1 %303 }
  0xfc   :  { %v157_v15 = vpop.f32.mrf.mxu0 }
  0xfd   :  { %v158_v16 = vadd.f32 %v349_v14, %v157_v15 }
  0xfe   :  { %v377_v17 = vpop.f32.mrf.mxu0 }
  0xff   :  { %v161_v18 = vmax.f32 %v158_v16, 0.0 }
 0x101   :  { %395 = vmatmul.mubr.msk.f32.vlgmr.msra.gmra.mxu1 %vm177_vm2, %v161_v18 }
 0x1c1   :  { %v247_v21 = vpop.f32.mrf.mxu1 }
 0x1c2   :  { %v248_v22 = vadd.f32 %v351_v20, %v247_v21 }
 0x1c3   :  { %v396_v23 = vpop.f32.mrf.mxu1 }
 0x1c4   :  { %407 = vtanh.f32 %v248_v22  ;;  %257 = vrot.lane.b32.xlu0 %v248_v22, %s505_s17 }
 0x1c8   :  { %284 = vrot.lane.b32.xlu0 %v255_v24, %s505_s17 }
 0x1d1   :  { %v408_v25 = vpop.eup %407 }
 0x1d2   :  { %v252_v26 = vsub.f32 0.0, %v408_v25 }
 0x1d4   :  { %v253_v27 = vmul.f32 1.442695, %v252_v26 }
 0x1d6   :  { %409 = vpow2.f32 %v253_v27 }
 0x1e3   :  { %v410_v28 = vpop.eup %409 }
 0x1e4   :  { %v276_v29 = vsel %vm275_vm3, %v410_v28, 0.0 }
 0x1e5   :  { %v277_v30 = vrot.slane %v276_v29, 4 }
 0x1e7   :  { %v278_v31 = vadd.f32 %v277_v30, %v276_v29 }
 0x1e9   :  { %v279_v32 = vrot.slane %v278_v31, 2 }
 0x1eb   :  { %v280_v33 = vadd.f32 %v279_v32, %v278_v31 }
 0x1ed   :  { %v281_v34 = vrot.slane %v280_v33, 1 }
 0x1ef   :  { %v282_v35 = vadd.f32 %v281_v34, %v280_v33 }
 0x1f1   :  { %315 = vrot.lane.b32.xlu1 %v282_v35, %s506_s3 }
 0x236   :  { %v258_v36 = vpop.permute.xlu0 %257 }
 0x237   :  { %v260_v38 = vmul.f32 %v410_v28, %v258_v36 }
 0x239   :  { %v295_v39 = vsel %vm275_vm3, %v260_v38, 0.0  ;;  %v306_v40 = vmul.f32 %v304_v37, %v260_v38 }
 0x23a   :  { %v296_v41 = vrot.slane %v295_v39, 4  ;;  %v285_v42 = vpop.permute.xlu0 %284 }
 0x23b   :  { %v307_v43 = vsel %vm275_vm3, %v306_v40, 0.0  ;;  %v287_v44 = vmul.f32 %v410_v28, %v285_v42 }
 0x23c   :  { %v297_v45 = vadd.f32 %v296_v41, %v295_v39  ;;  %v308_v46 = vrot.slane %v307_v43, 4 }
 0x23d   :  { %v288_v47 = vsel %vm275_vm3, %v287_v44, 0.0 }
 0x23e   :  { %v298_v48 = vrot.slane %v297_v45, 2  ;;  %v309_v49 = vadd.f32 %v308_v46, %v307_v43  ;;  %v289_v50 = vrot.slane %v288_v47, 4 }
 0x240   :  { %v299_v51 = vadd.f32 %v298_v48, %v297_v45  ;;  %v310_v52 = vrot.slane %v309_v49, 2  ;;  %v290_v53 = vadd.f32 %v289_v50, %v288_v47 }
 0x242   :  { %v291_v54 = vrot.slane %v290_v53, 2  ;;  %v300_v55 = vrot.slane %v299_v51, 1  ;;  %v311_v56 = vadd.f32 %v310_v52, %v309_v49 }
 0x244   :  { %v292_v57 = vadd.f32 %v291_v54, %v290_v53  ;;  %v301_v58 = vadd.f32 %v300_v55, %v299_v51  ;;  %v312_v61 = vrot.slane %v311_v56, 1 }
 0x246   :  { %323 = vrot.lane.b32.xlu1 %v301_v58, %s506_s3  ;;  %v293_v59 = vrot.slane %v292_v57, 1  ;;  %v313_v62 = vadd.f32 %v312_v61, %v311_v56 }
 0x248   :  { %v294_v60 = vadd.f32 %v293_v59, %v292_v57 }
 0x24a   :  { %319 = vrot.lane.b32.xlu0 %v294_v60, %s506_s3 }
 0x24e   :  { %327 = vrot.lane.b32.xlu0 %v313_v62, %s506_s3 }
 0x263   :  { %v316_v14 = vpop.permute.xlu1 %315 }
 0x264   :  { %v333_v15 = vsel %vm332_vm5, %v331_v13, %v316_v14 }
 0x2b8   :  { %v324_v18 = vpop.permute.xlu1 %323 }
 0x2bc   :  { %v320_v16 = vpop.permute.xlu0 %319 }
 0x2bd   :  { %v335_v17 = vsel %vm334_vm6, %v333_v15, %v320_v16 }
 0x2be   :  { %v337_v20 = vsel %vm336_vm7, %v335_v17, %v324_v18 }
 0x2c0   :  { %v328_v19 = vpop.permute.xlu0 %327 }
 0x2c1   :  { %v339_v21 = vsel %vm338_vm8, %v337_v20, %v328_v19 }
 0x2c2   :  { %341 = vst.msk [vmem:[%s580_s6] sm:$0x3f] %vm340_vm9, %v339_v21 }
 0x2c3   :  { %346 = vsyncpa [#allocation3], 1 }
 0x2c4   :  { %347 = vsyncpa [#allocation5], 1 }
 0x2c5   :  { %348 = vsyncpa [#allocation8], 1 }

</bundles_post_ra>
